<compile_context>
chip_gen: v7x
topology: tpu7x:2x2x1
jax: 0.10.0
libtpu: 0.0.40
codegen_flags: <defaults>
</compile_context>

<pallas_src>
import functools
import re

import jax
import jax.numpy as jnp
from jax import lax
from jax.experimental import pallas as pl
from jax.experimental.pallas import tpu as pltpu

LN_EPS = 1e-12
MAX_ONEHOT_VOCAB = 512   # past this, the one-hot gather path becomes a bad idea


# --------------------------------------------------------------------------
# Kernel
# --------------------------------------------------------------------------
def combo_kernel(ids_ref, pos_ref, table_ref, gamma_ref, beta_ref, out_ref,
                 *, use_mxu_stats):
    """Fused gather + position add + BertLayerNorm for one batch block.

    ids_ref   : (rows, 1)      int32  token ids, rows = Bt*S flattened rows
    pos_ref   : (S, D) or (rows, D)   f32 position embeddings (resident)
    table_ref : (V, D)         f32    fused table: concat(glyph, graph) + stroke
    gamma_ref : (1, D)         f32    LayerNorm scale (resident)
    beta_ref  : (1, D)         f32    LayerNorm shift (resident)
    out_ref   : (rows, D)             output
    """
    rows, d = out_ref.shape
    vocab = table_ref.shape[0]
    s = pos_ref.shape[0]

    # ---- fused embedding gather: one-hot MXU matmul (vocab is tiny) --------
    # Clamp ids so out-of-range tokens behave like jnp.take (clamped), not as
    # a silent all-zero embedding.
    # TODO(synk): for a real BERT-sized vocab, keep the table in HBM and do a
    #             DMA row gather (PrefetchScalarGridSpec + pl.Element or manual
    #             make_async_copy) instead of the one-hot matmul.
    ids = jnp.clip(ids_ref[...], 0, vocab - 1)                       # (rows, 1)
    onehot = (ids == lax.broadcasted_iota(jnp.int32, (rows, vocab), 1)
              ).astype(table_ref.dtype)                              # (rows, V)
    emb = jnp.dot(onehot, table_ref[...],
                  preferred_element_type=jnp.float32)                # (rows, D)

    # ---- add position embeddings (no wrapper-side tile) ---------------------
    if s == rows:
        # pos already covers every row (Bt == 1, or unaligned-S tiled fallback)
        x = emb + pos_ref[...]
    else:
        bt = rows // s
        # (rows, D) -> (Bt, S, D) is a free view when S % 8 == 0.
        x = (emb.reshape(bt, s, d) + pos_ref[...]).reshape(rows, d)

    # ---- BertLayerNorm: two-pass variance, exactly like the reference ------
    inv_d = jnp.float32(1.0 / d)
    if use_mxu_stats:
        # v7x: HBM is fast enough that VALU/XLU become the binding slots;
        # push the cross-lane row reductions onto the (nearly idle) MXU.
        ones_col = jnp.full((d, 1), inv_d, dtype=jnp.float32)        # (D, 1)
        mean = jnp.dot(x, ones_col, preferred_element_type=jnp.float32)
        xc = x - mean
        var = jnp.dot(xc * xc, ones_col, preferred_element_type=jnp.float32)
    else:
        mean = jnp.sum(x, axis=-1, keepdims=True) * inv_d
        xc = x - mean
        var = jnp.sum(xc * xc, axis=-1, keepdims=True) * inv_d

    inv_std = lax.rsqrt(var + LN_EPS)
    out_ref[...] = (xc * inv_std * gamma_ref[...] + beta_ref[...]
                    ).astype(out_ref.dtype)


# --------------------------------------------------------------------------
# Generation-aware tuning
# --------------------------------------------------------------------------
def _tpu_generation(default=6):
    """Best-effort TPU generation from device_kind ('TPU v5 lite', 'TPU v6e',
    'TPU7x', ...). Falls back to a conservative default."""
    try:
        kind = jax.devices()[0].device_kind
        m = re.search(r"(\d+)", kind)
        if m:
            return int(m.group(1))
    except Exception:
        pass
    return default


def _tuning_for_generation(gen):
    if gen >= 7:
        # v7x: 64 MiB physical VMEM, 2 TensorCores, 3.2 TB/s HBM.
        return dict(target_block_bytes=3 << 20,
                    vmem_limit_bytes=48 * 1024 * 1024,
                    use_mxu_stats=True)
    # v5e / v6e: 128 MiB physical VMEM, HBM-writeback-bound -> big slabs.
    return dict(target_block_bytes=8 << 20,
                vmem_limit_bytes=64 * 1024 * 1024,
                use_mxu_stats=False)


def _choose_block_b(B, S, D, target_bytes):
    """Pick a batch-block size Bt such that each grid step moves a multi-MiB
    slab, B % Bt == 0, (Bt*S) is sublane-aligned, the grid has >= 2 steps
    (both v7x TensorCores busy, output write pipelined) and is even when
    possible."""
    per_batch = S * D * 4
    want = max(1, min(B, target_bytes // max(1, per_batch)))
    if B >= 2:
        want = min(want, max(1, B // 2))      # keep at least 2 grid steps
    best = None
    for bt in range(int(want), 0, -1):
        if B % bt != 0:
            continue
        if bt != B and (bt * S) % 8 != 0:     # sublane alignment of (rows, D) block
            continue
        if best is None:
            best = bt
        if (B // bt) % 2 == 0:                # prefer an even grid (2 TCs on v7x)
            return bt
    if best is not None:
        return best
    # Pathological shapes (e.g. B prime and S % 8 != 0): grid = 1 fallback.
    # TODO(synk): pad B*S to a multiple of 8 (or grid over S) instead of
    #             falling back to grid=1, which idles one v7x TensorCore.
    return B


# --------------------------------------------------------------------------
# Wrapper
# --------------------------------------------------------------------------
def combo_position_embed(position_table, glyph_table, graph_table,
                         stroke_table, gamma, beta, input_ids,
                         out_dtype=jnp.float32):
    """Fused forward:  LN(pos[s] + (concat(glyph, graph) + stroke)[ids[b, s]]).

    position_table: (max_pos, D); glyph: (V, Dg); graph: (V, Dr);
    stroke: (V, D) with D = Dg + Dr; gamma/beta: (D,); input_ids: (B, S) int32.
    Returns (B, S, D) in `out_dtype` (float32 by default to match the module;
    pass bfloat16 if the downstream consumer accepts it — halves the only
    per-step HBM writeback).
    """
    B, S = input_ids.shape
    Dg = glyph_table.shape[1]
    Dr = graph_table.shape[1]
    D = Dg + Dr
    V = glyph_table.shape[0]
    assert stroke_table.shape == (V, D)
    assert position_table.shape[0] >= S, "seq_length exceeds max_position_embeddings"
    assert V <= MAX_ONEHOT_VOCAB, (
        "one-hot in-kernel gather is only sane for a tiny vocab; "
        "use an HBM row-gather (scalar prefetch + pl.Element / make_async_copy) "
        f"for V={V}")

    # concat(glyph, graph)[id] + stroke[id] == (concat(glyph, graph) + stroke)[id]
    # -> one tiny (V, D) table, one in-kernel gather, no in-kernel concat.
    fused_table = (jnp.concatenate([glyph_table, graph_table], axis=1)
                   + stroke_table).astype(jnp.float32)               # (V, D)

    tune = _tuning_for_generation(_tpu_generation())
    Bt = _choose_block_b(B, S, D, tune["target_block_bytes"])
    grid = (B // Bt,)
    rows = Bt * S

    ids2 = input_ids.reshape(B * S, 1).astype(jnp.int32)             # (B*S, 1)
    gamma2 = gamma.reshape(1, D).astype(jnp.float32)
    beta2 = beta.reshape(1, D).astype(jnp.float32)

    pos = position_table[:S].astype(jnp.float32)                     # (S, D)
    if S % 8 == 0 or Bt == 1:
        pos_arg = pos                        # resident (S, D); free in-kernel view
    else:
        pos_arg = jnp.tile(pos, (Bt, 1))     # rare unaligned-S fallback
    pos_rows = pos_arg.shape[0]

    # Advisory cost so XLA overlaps neighbors with this memory-bound kernel.
    cost = pl.CostEstimate(
        flops=2 * B * S * V * D + 10 * B * S * D,
        transcendentals=B * S,
        bytes_accessed=(B * S * D * jnp.dtype(out_dtype).itemsize    # writeback
                        + B * S * 4                                  # ids
                        + (V * D + pos_rows * D + 2 * D) * 4))       # residents

    kernel = functools.partial(combo_kernel,
                               use_mxu_stats=tune["use_mxu_stats"])

    out2 = pl.pallas_call(
        kernel,
        out_shape=jax.ShapeDtypeStruct((B * S, D), out_dtype),
        grid_spec=pl.GridSpec(
            grid=grid,
            in_specs=[
                pl.BlockSpec((rows, 1), lambda i: (i, 0)),       # ids (per block)
                pl.BlockSpec((pos_rows, D), lambda i: (0, 0)),   # pos (resident)
                pl.BlockSpec((V, D), lambda i: (0, 0)),          # fused table (resident)
                pl.BlockSpec((1, D), lambda i: (0, 0)),          # gamma (resident)
                pl.BlockSpec((1, D), lambda i: (0, 0)),          # beta (resident)
            ],
            out_specs=pl.BlockSpec((rows, D), lambda i: (i, 0)),
        ),
        compiler_params=pltpu.CompilerParams(
            dimension_semantics=("parallel",),
            vmem_limit_bytes=tune["vmem_limit_bytes"]),
        cost_estimate=cost,
    )(ids2, pos_arg, fused_table, gamma2, beta2)

    return out2.reshape(B, S, D)


def combo_position_embedder_forward(params, input_ids):
    """Full module forward.  Everything downstream of the (synthetic)
    sub-encoder tables is fused into the single Pallas kernel."""
    embeddings = combo_position_embed(
        params["position_table"], params["glyph_table"], params["graph_table"],
        params["stroke_table"], params["ln_gamma"], params["ln_beta"],
        input_ids)

    # dropout: inference-mode identity
    glyph_cls_loss = jnp.float32(0.0)  # TODO(synk): glyph encoder loss not reproducible from given source
    return embeddings, glyph_cls_loss


# --------------------------------------------------------------------------
# Pure-JAX reference (original, un-fused formulation) for correctness check
# --------------------------------------------------------------------------
def _reference(params, input_ids):
    B, S = input_ids.shape
    glyph = jnp.take(params["glyph_table"], input_ids, axis=0)
    graph = jnp.take(params["graph_table"], input_ids, axis=0)
    stroke = jnp.take(params["stroke_table"], input_ids, axis=0)
    pos = params["position_table"][:S][None, :, :]
    x = pos + jnp.concatenate([glyph, graph], axis=2) + stroke
    mean = jnp.mean(x, axis=-1, keepdims=True)
    var = jnp.mean((x - mean) ** 2, axis=-1, keepdims=True)
    xn = (x - mean) / jnp.sqrt(var + LN_EPS)
    return xn * params["ln_gamma"] + params["ln_beta"]


if __name__ == "__main__":
    # Small shapes consistent with the module.
    B, S = 4, 16
    Dg, Dr = 128, 128            # configGlyph.output_size, configGraph.output_size
    D = Dg + Dr
    MAX_POS = 64                 # configGraph.max_position_embeddings
    VOCAB = 32

    key = jax.random.PRNGKey(0)
    k1, k2, k3, k4, k5 = jax.random.split(key, 5)

    params = {
        "position_table": 0.02 * jax.random.normal(k1, (MAX_POS, D), jnp.float32),
        "glyph_table":    0.02 * jax.random.normal(k2, (VOCAB, Dg), jnp.float32),
        "graph_table":    0.02 * jax.random.normal(k3, (VOCAB, Dr), jnp.float32),
        "stroke_table":   0.02 * jax.random.normal(k4, (VOCAB, D), jnp.float32),
        "ln_gamma": jnp.ones((D,), jnp.float32),
        "ln_beta":  jnp.zeros((D,), jnp.float32),
    }

    input_ids = jax.random.randint(k5, (B, S), 0, VOCAB, dtype=jnp.int32)

    embeddings, glyph_cls_loss = combo_position_embedder_forward(params, input_ids)
    embeddings = jax.block_until_ready(embeddings)

    ref = _reference(params, input_ids)
    assert embeddings.shape == (B, S, D)
    assert jnp.allclose(embeddings, ref, atol=1e-4, rtol=1e-4), "mismatch vs reference"

    print("KERNEL_OK")
</pallas_src>

<mosaic_0001>
module attributes {stable_mosaic.version = 11 : i64} {
  func.func @combo_kernel(%arg0: i32, %arg1: memref<32x1xi32, #tpu.memory_space<vmem>>, %arg2: memref<16x256xf32, #tpu.memory_space<vmem>>, %arg3: memref<32x256xf32, #tpu.memory_space<vmem>>, %arg4: memref<1x256xf32, #tpu.memory_space<vmem>>, %arg5: memref<1x256xf32, #tpu.memory_space<vmem>>, %arg6: memref<32x256xf32, #tpu.memory_space<vmem>>) attributes {dimension_semantics = [#tpu.dimension_semantics<parallel>], iteration_bounds = array<i64: 2>, scalar_prefetch = 0 : i64, scratch_operands = 0 : i64, tpu.core_type = #tpu.core_type<tc>, window_params = [{transform_indices = @transform_0, window_bounds = array<i64: 32, 1>}, {pipeline_mode = #tpu.pipeline_mode<synchronous>, transform_indices = @transform_1, window_bounds = array<i64: 16, 256>}, {pipeline_mode = #tpu.pipeline_mode<synchronous>, transform_indices = @transform_2, window_bounds = array<i64: 32, 256>}, {pipeline_mode = #tpu.pipeline_mode<synchronous>, transform_indices = @transform_3, window_bounds = array<i64: 1, 256>}, {pipeline_mode = #tpu.pipeline_mode<synchronous>, transform_indices = @transform_4, window_bounds = array<i64: 1, 256>}, {transform_indices = @transform_5, window_bounds = array<i64: 32, 256>}]} {
    %c0 = arith.constant 0 : index
    %c0_0 = arith.constant 0 : index
    %0 = vector.load %arg1[%c0, %c0_0] : memref<32x1xi32, #tpu.memory_space<vmem>>, vector<32x1xi32>
    %c0_i32 = arith.constant 0 : i32
    %c31_i32 = arith.constant 31 : i32
    %1 = vector.broadcast %c0_i32 : i32 to vector<32x1xi32>
    %2 = arith.maxsi %1, %0 : vector<32x1xi32>
    %3 = vector.broadcast %c31_i32 : i32 to vector<32x1xi32>
    %4 = arith.minsi %3, %2 : vector<32x1xi32>
    %5 = tpu.iota {dimensions = array<i32: 1>} : vector<32x32xi32>
    %6 = vector.broadcast %4 : vector<32x1xi32> to vector<32x32xi32>
    %7 = arith.cmpi eq, %6, %5 : vector<32x32xi32>
    %8 = arith.extui %7 : vector<32x32xi1> to vector<32x32xi32>
    %9 = arith.sitofp %8 : vector<32x32xi32> to vector<32x32xf32>
    %c0_1 = arith.constant 0 : index
    %c0_2 = arith.constant 0 : index
    %10 = vector.load %arg3[%c0_1, %c0_2] : memref<32x256xf32, #tpu.memory_space<vmem>>, vector<32x256xf32>
    %cst = arith.constant dense<0.000000e+00> : vector<32x256xf32>
    %11 = tpu.matmul %9, %10, %cst {dimension_numbers = #tpu.dot_dimension_numbers<[1], [0], [0], [1], [0, 0, 1, 1], [], []>} : vector<32x32xf32>, vector<32x256xf32>, vector<32x256xf32> -> vector<32x256xf32>
    %12 = vector.shape_cast %11 : vector<32x256xf32> to vector<2x16x256xf32>
    %c0_3 = arith.constant 0 : index
    %c0_4 = arith.constant 0 : index
    %13 = vector.load %arg2[%c0_3, %c0_4] : memref<16x256xf32, #tpu.memory_space<vmem>>, vector<16x256xf32>
    %14 = vector.shape_cast %13 : vector<16x256xf32> to vector<1x16x256xf32>
    %15 = vector.broadcast %14 : vector<1x16x256xf32> to vector<2x16x256xf32>
    %16 = arith.addf %12, %15 : vector<2x16x256xf32>
    %17 = vector.shape_cast %16 : vector<2x16x256xf32> to vector<32x256xf32>
    %cst_5 = arith.constant dense<0.000000e+00> : vector<32xf32>
    %18 = vector.multi_reduction <add>, %17, %cst_5 [1] : vector<32x256xf32> to vector<32xf32>
    %19 = vector.shape_cast %18 : vector<32xf32> to vector<32x1xf32>
    %cst_6 = arith.constant 3.906250e-03 : f32
    %20 = vector.broadcast %cst_6 : f32 to vector<32x1xf32>
    %21 = arith.mulf %19, %20 : vector<32x1xf32>
    %22 = vector.broadcast %21 : vector<32x1xf32> to vector<32x256xf32>
    %23 = arith.subf %17, %22 : vector<32x256xf32>
    %24 = arith.mulf %23, %23 : vector<32x256xf32>
    %cst_7 = arith.constant dense<0.000000e+00> : vector<32xf32>
    %25 = vector.multi_reduction <add>, %24, %cst_7 [1] : vector<32x256xf32> to vector<32xf32>
    %26 = vector.shape_cast %25 : vector<32xf32> to vector<32x1xf32>
    %cst_8 = arith.constant 3.906250e-03 : f32
    %27 = vector.broadcast %cst_8 : f32 to vector<32x1xf32>
    %28 = arith.mulf %26, %27 : vector<32x1xf32>
    %cst_9 = arith.constant 9.99999996E-13 : f32
    %29 = vector.broadcast %cst_9 : f32 to vector<32x1xf32>
    %30 = arith.addf %28, %29 : vector<32x1xf32>
    %31 = math.rsqrt %30 : vector<32x1xf32>
    %32 = vector.broadcast %31 : vector<32x1xf32> to vector<32x256xf32>
    %33 = arith.mulf %23, %32 : vector<32x256xf32>
    %c0_10 = arith.constant 0 : index
    %c0_11 = arith.constant 0 : index
    %34 = vector.load %arg4[%c0_10, %c0_11] : memref<1x256xf32, #tpu.memory_space<vmem>>, vector<1x256xf32>
    %35 = vector.broadcast %34 : vector<1x256xf32> to vector<32x256xf32>
    %36 = arith.mulf %33, %35 : vector<32x256xf32>
    %c0_12 = arith.constant 0 : index
    %c0_13 = arith.constant 0 : index
    %37 = vector.load %arg5[%c0_12, %c0_13] : memref<1x256xf32, #tpu.memory_space<vmem>>, vector<1x256xf32>
    %38 = vector.broadcast %37 : vector<1x256xf32> to vector<32x256xf32>
    %39 = arith.addf %36, %38 : vector<32x256xf32>
    %c0_14 = arith.constant 0 : index
    %c0_15 = arith.constant 0 : index
    %40 = vector.load %arg6[%c0_14, %c0_15] : memref<32x256xf32, #tpu.memory_space<vmem>>, vector<32x256xf32>
    tpu.vector_store %arg6[%c0_14, %c0_15], %39 {strides = array<i32>} : memref<32x256xf32, #tpu.memory_space<vmem>>, vector<32x256xf32>,
    return
  }
  func.func @transform_0(%arg0: i32) -> (i32, i32) {
    %c0_i32 = arith.constant 0 : i32
    %c0_i32_0 = arith.constant 0 : i32
    return %arg0, %c0_i32 : i32, i32
  }
  func.func @transform_1(%arg0: i32) -> (i32, i32) {
    %c0_i32 = arith.constant 0 : i32
    %c0_i32_0 = arith.constant 0 : i32
    %c0_i32_1 = arith.constant 0 : i32
    return %c0_i32, %c0_i32_0 : i32, i32
  }
  func.func @transform_2(%arg0: i32) -> (i32, i32) {
    %c0_i32 = arith.constant 0 : i32
    %c0_i32_0 = arith.constant 0 : i32
    %c0_i32_1 = arith.constant 0 : i32
    return %c0_i32, %c0_i32_0 : i32, i32
  }
  func.func @transform_3(%arg0: i32) -> (i32, i32) {
    %c0_i32 = arith.constant 0 : i32
    %c0_i32_0 = arith.constant 0 : i32
    %c0_i32_1 = arith.constant 0 : i32
    return %c0_i32, %c0_i32_0 : i32, i32
  }
  func.func @transform_4(%arg0: i32) -> (i32, i32) {
    %c0_i32 = arith.constant 0 : i32
    %c0_i32_0 = arith.constant 0 : i32
    %c0_i32_1 = arith.constant 0 : i32
    return %c0_i32, %c0_i32_0 : i32, i32
  }
  func.func @transform_5(%arg0: i32) -> (i32, i32) {
    %c0_i32 = arith.constant 0 : i32
    %c0_i32_0 = arith.constant 0 : i32
    return %arg0, %c0_i32 : i32, i32
  }
}

</mosaic_0001>

<bundles_post_ra>
// kernel: tpu_custom_call.1
= control target key start
LH: loop header
LB: loop body
LE: loop exit
PB: predicated region body
PF: predicated region fallthrough
CT: control target
= control target key end

     0   :  { %10 = vsyncpa [#allocation3], 0  ;;  %s1416_s0 = inlined_call_operand.hbm [shape: s32[64,1], index: 0, kind: input, shape index: {}]   ;;  %s1417_s1 = inlined_call_operand.hbm [shape: f32[16,256], index: 1, kind: input, shape index: {}]   ;;  %s1418_s2 = inlined_call_operand.hbm [shape: f32[32,256], index: 2, kind: input, shape index: {}]   ;;  %s1419_s3 = inlined_call_operand.hbm [shape: f32[1,256], index: 3, kind: input, shape index: {}]   ;;  %s1420_s4 = inlined_call_operand.hbm [shape: f32[1,256], index: 4, kind: input, shape index: {}]   ;;  %s1421_s5 = inlined_call_operand.hbm [shape: f32[64,256], index: 5, kind: output, shape index: {}]  }
   0x1   :  { %12 = vsyncpa [#allocation3 + $0x1], 0 }
   0x2   :  { %13 = vsyncpa [#allocation6], 0 }
   0x3   :  { %14 = vsyncpa [#allocation9], 0 }
   0x4   :  { %15 = vsyncpa [#allocation4], 0 }
   0x5   :  { %17 = vsyncpa [#allocation4 + $0x1], 0  ;;  %s1118_s18 = smov 0   ;;  %s1120_s19 = smov 0  }
   0x6   :  { %s1122_s20 = smov 0   ;;  %s1124_s21 = smov 0  }
   0x7 LB: > { %s1139_s22 = sadd.s32 4294967295, %s1072_s21   ;;  %s705_s23 = sadd.s32 4294967294, %s1072_s21   ;;  %s1072_s21 = sphi %s1124_s21, %s1444_s21   ;;  %s1068_s20 = sphi %s1122_s20, %s1443_s20   ;;  %s1064_s19 = sphi %s1120_s19, %s1442_s19   ;;  %s1060_s18 = sphi %s1118_s18, %s1441_s18  }
   0x8   : > { %p43_p0 = scmp.ne.s32.totalorder %s1064_s19, %s1060_s18  ;;  %p1422_p1 = scmp.eq.s32.totalorder %s1139_s22, 0 }
   0x9   : > { %p157_p3 = scmp.eq.s32.totalorder %s705_s23, 1  ;;  %p706_p5 = scmp.ge.s32.totalorder %s1072_s21, 1 }
   0xa   : > { %p1148_p4 = por %p1422_p1, %p43_p0  ;;  %p164_p7 = scmp.lt.s32.totalorder %s1072_s21, 3 }
   0xb   : > { %p1153_p6 = por %p157_p3, %p43_p0  ;;  %s1074_s27 = smov [#allocation5]  }
   0xc   : > { %s1425_s24 = scalar_select %p1148_p4, 1, 0 }
   0xd   : > { %s1426_s25 = scalar_select %p1153_p6, 1, 0 }
   0xe   : > { %p1158_p8 = pnand %p706_p5, %p164_p7  ;;  %s176_s28 = sshll.u32 %s1074_s27, 4  ;;  %s1162_s28 = int_to_ptr.vmem [resolvable:$true] %s176_s28 }
   0xf   : > { %s1075_s30 = smov [#allocation8]   ;;  %s1076_s7 = smov [#allocation7]  }
  0x10   : > { %s1427_s26 = scalar_select %p1158_p8, 1, 0 }
  0x11   : > { %p771_p9 = pneg %p1158_p8  ;;  %s203_s6 = sshll.u32 %s1075_s30, 4  ;;  %s1173_s6 = int_to_ptr.vmem [resolvable:$true] %s203_s6 }
  0x12   : > { %s1175_s8 = sshll.u32 %s1076_s7, 4  ;;  %s856_s11 = scalar_lea.hbm %s1417_s1, 512  ;;  %s190_s8 = int_to_ptr.vmem [resolvable:$true] %s1175_s8 }
  0x13   : > { %p1169_p11 = pnand %p771_p9, %p1422_p1  ;;  %p857_p12 = scmp.ne.s32.totalorder %s1417_s1, %s856_s11 }
  0x14   : > { %p863_p5 = scmp.lt.u32.totalorder %s856_s11, %s1417_s1 }
  0x15   : > { %p1185_p13 = pneg %p1169_p11 }
  0x17   : > { %p859_p0 = pnand %p1185_p13, %p857_p12 }
  0x19   : > { %p860_p3 = pneg %p859_p0 }
  0x1b   : > { %p865_p7 = pnand %p863_p5, %p860_p3 }
  0x1d   : > { %868 = shalt.err (!%p865_p7)
}
  0x1e   : > { %s869_s17 = scalar_lea.vmem %s1162_s28, 512  ;;  %p877_p2 = scmp.lt.s32.totalorder %s1162_s28, %s1162_s28 }
  0x1f   : > { %p870_p9 = scmp.ne.s32.totalorder %s1162_s28, %s869_s17  ;;  %p878_p6 = scmp.lt.s32.totalorder %s869_s17, %s869_s17 }
  0x21   : > { %p872_p10 = pnand %p870_p9, %p1185_p13  ;;  %p879_p12 = por %p878_p6, %p877_p2 }
  0x23   : > { %p873_p1 = pneg %p872_p10 }
  0x25   : > { %p880_p0 = pnand %p879_p12, %p873_p1 }
  0x27   : > { %883 = shalt.err (!%p880_p0)
}
  0x28   : > { %s1077_s23 = smov 256   ;;  %s1078_s27 = smov 16  }
  0x29   : > { %774 = dma.hbm_to_vmem [thread:$0]  (!%p1169_p11), %s1417_s1, 512, %s1162_s28, [#allocation6], %s1077_s23, %s1077_s23, %s1078_s27  }
  0x2a   : > { %s884_s11 = scalar_lea.hbm %s1419_s3, 32 }
  0x2b   : > { %p885_p1 = scmp.ne.s32.totalorder %s1419_s3, %s884_s11  ;;  %p891_p10 = scmp.lt.u32.totalorder %s884_s11, %s1419_s3 }
  0x2d   : > { %p887_p2 = pnand %p885_p1, %p1185_p13 }
  0x2f   : > { %p888_p6 = pneg %p887_p2 }
  0x31   : > { %p893_p3 = pnand %p891_p10, %p888_p6 }
  0x33   : > { %896 = shalt.err (!%p893_p3)
}
  0x34   : > { %s897_s28 = scalar_lea.vmem %s1173_s6, 32  ;;  %p905_p12 = scmp.lt.s32.totalorder %s1173_s6, %s1173_s6 }
  0x35   : > { %p898_p5 = scmp.ne.s32.totalorder %s1173_s6, %s897_s28  ;;  %p906_p0 = scmp.lt.s32.totalorder %s897_s28, %s897_s28 }
  0x37   : > { %p900_p7 = pnand %p898_p5, %p1185_p13  ;;  %p907_p1 = por %p906_p0, %p905_p12 }
  0x39   : > { %p901_p9 = pneg %p900_p7 }
  0x3b   : > { %p908_p2 = pnand %p907_p1, %p901_p9 }
  0x3d   : > { %911 = shalt.err (!%p908_p2)
}
  0x3e   : > { %780 = dma.hbm_to_vmem [thread:$0]  (!%p1169_p11), %s1419_s3, 32, %s1173_s6, [#allocation9]  }
  0x3f   : > { %s912_s10 = scalar_lea.hbm %s1418_s2, 1024 }
  0x40   : > { %p913_p6 = scmp.ne.s32.totalorder %s1418_s2, %s912_s10  ;;  %p919_p5 = scmp.lt.u32.totalorder %s912_s10, %s1418_s2 }
  0x42   : > { %p915_p10 = pnand %p913_p6, %p1185_p13 }
  0x44   : > { %p916_p3 = pneg %p915_p10 }
  0x46   : > { %p921_p7 = pnand %p919_p5, %p916_p3 }
  0x48   : > { %924 = shalt.err (!%p921_p7)
}
  0x49   : > { %s925_s16 = scalar_lea.vmem %s190_s8, 1024  ;;  %p933_p1 = scmp.lt.s32.totalorder %s190_s8, %s190_s8 }
  0x4a   : > { %p926_p9 = scmp.ne.s32.totalorder %s190_s8, %s925_s16  ;;  %p934_p2 = scmp.lt.s32.totalorder %s925_s16, %s925_s16 }
  0x4c   : > { %p928_p12 = pnand %p926_p9, %p1185_p13  ;;  %p935_p4 = por %p934_p2, %p933_p1 }
  0x4e   : > { %p929_p0 = pneg %p928_p12 }
  0x50   : > { %p936_p8 = pnand %p935_p4, %p929_p0 }
  0x52   : > { %939 = shalt.err (!%p936_p8)
}
  0x53   : > { %777 = dma.hbm_to_vmem [thread:$0]  (!%p1169_p11), %s1418_s2, 1024, %s190_s8, [#allocation6], %s1077_s23, %s1077_s23, %s1078_s27  }
  0x54   : > { %s1079_s17 = smov [#allocation10]   ;;  %s940_s10 = scalar_lea.hbm %s1420_s4, 32 }
  0x55   : > { %s214_s30 = sshll.u32 %s1079_s17, 4  ;;  %p941_p4 = scmp.ne.s32.totalorder %s1420_s4, %s940_s10  ;;  %s215_s30 = int_to_ptr.vmem [resolvable:$true] %s214_s30 }
  0x56   : > { %p947_p10 = scmp.lt.u32.totalorder %s940_s10, %s1420_s4 }
  0x57   : > { %p943_p8 = pnand %p941_p4, %p1185_p13 }
  0x59   : > { %p944_p6 = pneg %p943_p8 }
  0x5b   : > { %p949_p3 = pnand %p947_p10, %p944_p6 }
  0x5d   : > { %952 = shalt.err (!%p949_p3)
}
  0x5e   : > { %s953_s8 = scalar_lea.vmem %s215_s30, 32  ;;  %p961_p12 = scmp.lt.s32.totalorder %s215_s30, %s215_s30 }
  0x5f   : > { %p954_p5 = scmp.ne.s32.totalorder %s215_s30, %s953_s8  ;;  %p962_p0 = scmp.lt.s32.totalorder %s953_s8, %s953_s8 }
  0x61   : > { %p956_p7 = pnand %p954_p5, %p1185_p13  ;;  %p963_p1 = por %p962_p0, %p961_p12 }
  0x63   : > { %p957_p9 = pneg %p956_p7 }
  0x65   : > { %p964_p2 = pnand %p963_p1, %p957_p9 }
  0x67   : > { %967 = shalt.err (!%p964_p2)
}
  0x68   : > { %783 = dma.hbm_to_vmem [thread:$0]  (!%p1169_p11), %s1420_s4, 32, %s215_s30, [#allocation9]  }
  0x69   : > { %s1273_s14 = sadd.s32 1, %s1072_s21   ;;  %s30_s16 = sadd.s32 1, %s1068_s20 }
  0x6a   : > { %s27_s29 = ssub.s32 %s1072_s21, %s1273_s14  ;;  %p37_p13 = scmp.ne.s32.totalorder %s1068_s20, %s1064_s19 }
  0x6b   : > { %p28_p4 = scmp.eq.s32.totalorder %s27_s29, 0  ;;  %p38_p8 = scmp.eq.s32.totalorder %s1072_s21, 0 }
  0x6c   : > { %p1430_p6 = scmp.eq.s32.totalorder %s1139_s22, 1  ;;  %p796_p3 = scmp.lt.s32.totalorder %s1072_s21, 2 }
  0x6d   : > { %s1289_s28 = scalar_select %p28_p4, %s1068_s20, %s30_s16  }
  0x6e   : > { %p1283_p10 = por %p1430_p6, %p37_p13  ;;  %p39_p5 = por %p38_p8, %p37_p13 }
  0x6f   : > { %s225_s17 = sand.u32 1, %s1068_s20   ;;  %s736_s30 = sshll.u32 %s1072_s21, 9 }
  0x70   : > { %s712_s7 = sshll.u32 %s225_s17, 5  ;;  %s1296_s11 = scalar_lea.hbm %s1416_s0, %s736_s30 }
  0x71   : > { %s229_s12 = scalar_lea.vmem [#allocation2], %s712_s7  ;;  %p1300_p11 = pnand %p796_p3, %p39_p5 }
  0x72   : > { %s236_s13 = sshll.u32 %s229_s12, 4  ;;  %s1304_s8 = scalar_lea.sflag [#allocation3], %s225_s17  ;;  %s1298_s13 = int_to_ptr.vmem [resolvable:$true] %s236_s13 }
  0x73   : > { %s968_s23 = scalar_lea.hbm %s1296_s11, 512  ;;  %p970_p9 = pneg %p1300_p11 }
  0x74   : > { %p969_p7 = scmp.ne.s32.totalorder %s1296_s11, %s968_s23  ;;  %s973_s29 = scalar_lea.hbm %s1416_s0, 1024 }
  0x75   : > { %p974_p1 = scmp.lt.u32.totalorder %s1296_s11, %s1416_s0  ;;  %p975_p2 = scmp.lt.u32.totalorder %s973_s29, %s968_s23 }
  0x76   : > { %p971_p12 = pnand %p970_p9, %p969_p7  ;;  %p977_p4 = scmp.lt.u32.totalorder %s968_s23, %s1296_s11 }
  0x77   : > { %p976_p13 = por %p975_p2, %p974_p1 }
  0x78   : > { %p972_p0 = pneg %p971_p12 }
  0x79   : > { %p978_p8 = por %p977_p4, %p976_p13 }
  0x7b   : > { %p979_p6 = pnand %p978_p8, %p972_p0 }
  0x7d   : > { %982 = shalt.err (!%p979_p6)
}
  0x7e   : > { %s983_s17 = scalar_lea.vmem %s1298_s13, 512  ;;  %s1080_s9 = smov [#allocation2]  }
  0x7f   : > { %p984_p3 = scmp.ne.s32.totalorder %s1298_s13, %s983_s17  ;;  %s988_s10 = sshll.u32 %s1080_s9, 4  ;;  %s989_s10 = int_to_ptr.vmem [resolvable:$false] %s988_s10 }
  0x80   : > { %s990_s12 = scalar_lea.vmem %s989_s10, 1024  ;;  %p991_p12 = scmp.lt.s32.totalorder %s1298_s13, %s989_s10 }
  0x81   : > { %p986_p5 = pnand %p984_p3, %p970_p9  ;;  %p992_p1 = scmp.lt.s32.totalorder %s990_s12, %s983_s17 }
  0x83   : > { %p987_p7 = pneg %p986_p5  ;;  %p993_p2 = por %p992_p1, %p991_p12 }
  0x85   : > { %p994_p13 = pnand %p993_p2, %p987_p7 }
  0x87   : > { %997 = shalt.err (!%p994_p13)
}
  0x88   : > { %s1081_s23 = smov 128   ;;  %s1082_s27 = smov 8  }
  0x89   : > { %787 = dma.hbm_to_vmem [thread:$0]  (!%p1300_p11), %s1296_s11, 512, %s1298_s13, %s1304_s8, %s1081_s23, %s1081_s23, %s1082_s27  }
  0x8a   : > { %p1433_p9 = scmp.ne.s32.totalorder %s1427_s26, 0 }
  0x8b   : > { %s1335_s16 = sand.u32 (!%p1433_p9), 1, %s1064_s19   ;;  %p1434_p0 = scmp.ne.s32.totalorder (!%p1433_p9), %s1425_s24, 0 }
  0x8c   : > { %248 = sbr.rel (%p1433_p9) target bundleno = 842 (0x34a), region = 40  ;;  %s716_s29 = sshll.u32 (!%p1433_p9), %s1335_s16, 5 }
  0x8d   : > { %s251_s7 = scalar_lea.sflag (!%p1433_p9), [#allocation3], %s1335_s16  ;;  %s254_s30 = scalar_lea.vmem (!%p1433_p9), [#allocation2], %s716_s29 }
  0x93   : > { %1043 = dma.done.wait (%p1434_p0), %s251_s7, 512  }
  0x94   : > { %1045 = vsyncadd (%p1434_p0), %s251_s7, 4294966784  ;;  %p1435_p4 = scmp.eq.s32.totalorder %s1139_s22, 0 }
  0x96   : > { %1047 = dma.done.wait (%p1435_p4), [#allocation6], 1536   ;;  %p1436_p11 = pmov %p1435_p4 }
  0x97   : > { %p1437_p8 = pmov %p1435_p4 }
  0x98   : > { %1049 = vsyncadd (%p1436_p11), [#allocation6], 4294965760 }
  0x99   : > { %1051 = dma.done.wait (%p1437_p8), [#allocation9], 64   ;;  %p1438_p6 = pmov %p1435_p4 }
  0x9a   : > { %v1083_v0 = vmov 0   ;;  %v1084_v1 = vmov 0.0   ;;  %v300_v2 = vld [vmem:[%s254_s30 + $0x8] sm:$0xff]  ;;  %v299_v3 = vld [vmem:[%s254_s30] sm:$0xff]  ;;  %v302_v4 = vld [vmem:[%s254_s30 + $0x18] sm:$0xff]  ;;  %v319_v26 = vlaneseq  ;;  %vm353_vm8 = vcmask 261120  }
  0x9b   : > { %1053 = vsyncadd (%p1438_p6), [#allocation9], 4294967232  ;;  %847 = vset.pattern.permute.xlu1 %v1083_v0  ;;  %846 = vset.pattern.permute.xlu0 %v1083_v0  ;;  %vm305_vm0 = vcmp.gt.s32.totalorder %v300_v2, 0  ;;  %vm303_vm1 = vcmp.gt.s32.totalorder %v299_v3, 0  ;;  %vm309_vm2 = vcmp.gt.s32.totalorder %v302_v4, 0  ;;  %v301_v5 = vld [vmem:[%s254_s30 + $0x10] sm:$0xff] }
  0x9c   : > { %430 = vmatprep.mubr.f32.mxu0 %v1084_v1  ;;  %442 = vmatprep.mubr.f32.mxu1 %v1084_v1  ;;  %v346_v6 = vld [vmem:[#allocation7 + $0x8] sm:$0xff]  ;;  %v348_v7 = vld [vmem:[#allocation7 + $0x18] sm:$0xff]  ;;  %v306_v8 = vsel %vm305_vm0, %v300_v2, 0  ;;  %v304_v9 = vsel %vm303_vm1, %v299_v3, 0  ;;  %v310_v10 = vsel %vm309_vm2, %v302_v4, 0  ;;  %vm307_vm3 = vcmp.gt.s32.totalorder %v301_v5, 0 }
  0x9d   : > { %v345_v11 = vld [vmem:[#allocation7] sm:$0xff]  ;;  %v347_v12 = vld [vmem:[#allocation7 + $0x10] sm:$0xff]  ;;  %vm313_vm4 = vcmp.lt.s32.totalorder %v306_v8, 31  ;;  %vm311_vm5 = vcmp.lt.s32.totalorder %v304_v9, 31  ;;  %vm317_vm6 = vcmp.lt.s32.totalorder %v310_v10, 31  ;;  %v308_v13 = vsel %vm307_vm3, %v301_v5, 0 }
  0x9e   : > { %v350_v14 = vld [vmem:[#allocation7 + $0x28] sm:$0xff]  ;;  %v352_v15 = vld [vmem:[#allocation7 + $0x38] sm:$0xff]  ;;  %v314_v16 = vsel %vm313_vm4, %v306_v8, 31  ;;  %v312_v17 = vsel %vm311_vm5, %v304_v9, 31  ;;  %vm315_vm7 = vcmp.lt.s32.totalorder %v308_v13, 31  ;;  %v739_v18 = vpack.c.bf16 %v348_v7, %v346_v6  ;;  %v349_v20 = vld [vmem:[#allocation7 + $0x20] sm:$0xff] }
  0x9f   : > { %325 = vperm.xlu1 %847, %v314_v16   ;;  %322 = vperm.xlu0 %846, %v312_v17   ;;  %v741_v19 = vpack.c.bf16 %v347_v12, %v345_v11  ;;  %v351_v21 = vld [vmem:[#allocation7 + $0x30] sm:$0xff]  ;;  %v318_v22 = vsel %vm317_vm6, %v310_v10, 31  ;;  %v316_v23 = vsel %vm315_vm7, %v308_v13, 31  ;;  %v743_v24 = vpack.c.bf16 %v352_v15, %v350_v14  ;;  %v455_v36 = vld [vmem:[#allocation5] sm:$0xff]  ;;  %v456_v37 = vld [vmem:[#allocation5 + $0x8] sm:$0xff]  ;;  %s721_s24 = sshll.u32 %s1335_s16, 6 }
  0xa0   : > { %740 = vmatprep.subr.bf16.mxu0 %v739_v18  ;;  %747 = vmatprep.subr.bf16.mxu1 %v739_v18  ;;  %v745_v25 = vpack.c.bf16 %v351_v21, %v349_v20  ;;  %v320_v27 = vand.u32 127, %v319_v26  ;;  %v457_v42 = vld [vmem:[#allocation5 + $0x10] sm:$0xff]  ;;  %v458_v43 = vld [vmem:[#allocation5 + $0x18] sm:$0xff]  ;;  %s296_s26 = scalar_lea.vmem [#allocation11], %s721_s24  ;;  %s738_s11 = sshll.u32 %s1139_s22, 10 }
  0xa1   : > { %742 = vmatpush1.bf16.msra.mxu0 %v741_v19  ;;  %749 = vmatpush1.bf16.msra.mxu1 %v741_v19  ;;  %s594_s13 = sshll.u32 %s296_s26, 4  ;;  %s1370_s17 = scalar_lea.hbm %s1421_s5, %s738_s11  ;;  %s1372_s13 = int_to_ptr.vmem [resolvable:$true] %s594_s13 }
  0xa2   : > { %744 = vmatprep.subr.bf16.mxu0 %v743_v24  ;;  %748 = vmatprep.subr.bf16.mxu1 %v743_v24  ;;  %s580_s22 = scalar_lea.sflag [#allocation4], %s1335_s16  ;;  %s998_s9 = scalar_lea.vmem %s1372_s13, 1024 }
  0xa3   : > { %331 = vperm.xlu1 %847, %v318_v22   ;;  %328 = vperm.xlu0 %846, %v316_v23   ;;  %p999_p3 = scmp.ne.s32.totalorder %s1372_s13, %s998_s9  ;;  %s1085_s10 = smov [#allocation11]  }
  0xa4   : > { %s1002_s12 = sshll.u32 %s1085_s10, 4  ;;  %s1003_s12 = int_to_ptr.vmem [resolvable:$false] %s1002_s12 }
  0xa5   : > { %746 = vmatpush1.bf16.msra.mxu0 %v745_v25  ;;  %750 = vmatpush1.bf16.msra.mxu1 %v745_v25  ;;  %p1000_p5 = pnand %p999_p3, %p1283_p10  ;;  %s1004_s23 = scalar_lea.vmem %s1003_s12, 2048 }
  0xa6   : > { %p1005_p12 = scmp.lt.s32.totalorder %s1372_s13, %s1003_s12  ;;  %p1006_p1 = scmp.lt.s32.totalorder %s1004_s23, %s998_s9 }
  0xa7   : > { %p1001_p7 = pneg %p1000_p5 }
  0xa8   : > { %p1007_p2 = por %p1006_p1, %p1005_p12 }
  0xaa   : > { %p1008_p13 = pnand %p1007_p2, %p1001_p7 }
 0x11e   : > { %v326_v28 = vpop.permute.xlu1 %325  ;;  %v323_v29 = vpop.permute.xlu0 %322 }
 0x11f   : > { %vm334_vm9 = vcmp.eq.s32.totalorder %v326_v28, %v320_v27  ;;  %vm333_vm10 = vcmp.eq.s32.totalorder %v323_v29, %v320_v27 }
 0x120   : > { %v722_v30 = vsel %vm333_vm10, 1.0, %v1084_v1  ;;  %v723_v31 = vsel %vm334_vm9, 1.0, %v1084_v1 }
 0x121   : > { %726 = vmatmul.mubr.msk.f32.vlgmr.msra.gmra.mrb[0].mxu0 %vm353_vm8, %v722_v30 }
 0x122   : > { %v332_v32 = vpop.permute.xlu1 %331  ;;  %v329_v33 = vpop.permute.xlu0 %328  ;;  %436 = vmatprep.mubr.f32.mxu0 %v1084_v1 }
 0x123   : > { %vm335_vm11 = vcmp.eq.s32.totalorder %v329_v33, %v320_v27  ;;  %vm336_vm12 = vcmp.eq.s32.totalorder %v332_v32, %v320_v27  ;;  %v534_v32 = vshrl.u32 %v319_v26, 7 }
 0x124   : > { %v724_v34 = vsel %vm335_vm11, 1.0, %v1084_v1  ;;  %v725_v35 = vsel %vm336_vm12, 1.0, %v1084_v1 }
 0x125   : > { %727 = vmatmul.mubr.msk.f32.gmra.mrb[2].mxu0 %vm353_vm8, %v723_v31  ;;  %728 = vmatmul.mubr.msk.f32.vlgmr.msra.gmra.mrb[0].mxu1 %vm353_vm8, %v724_v34 }
 0x126   : > { %448 = vmatprep.mubr.f32.mxu1 %v1084_v1 }
 0x129   : > { %729 = vmatmul.mubr.msk.f32.gmra.mrb[2].mxu1 %vm353_vm8, %v725_v35 }
 0x1f4   : > { %v432_v38 = vpop.f32.mrb[0].mxu0 }
 0x1f5   : > { %v459_v39 = vadd.f32 %v455_v36, %v432_v38  ;;  %v434_v40 = vpop.f32.mrb[1].mxu0  ;;  %v539_v38 = vsub.s32 1, %v534_v32 }
 0x1f6   : > { %v460_v41 = vadd.f32 %v456_v37, %v434_v40  ;;  %v531_v40 = vld [vmem:[#allocation8] sm:$0x3] }
 0x1f8   : > { %v438_v44 = vpop.f32.mrb[2].mxu0  ;;  %v444_v45 = vpop.f32.mrb[0].mxu1  ;;  %v467_v46 = vadd.f32 %v460_v41, %v459_v39 }
 0x1f9   : > { %v461_v47 = vadd.f32 %v457_v42, %v438_v44  ;;  %v463_v48 = vadd.f32 %v455_v36, %v444_v45  ;;  %v440_v49 = vpop.f32.mrb[3].mxu0  ;;  %v446_v50 = vpop.f32.mrb[1].mxu1 }
 0x1fa   : > { %v462_v51 = vadd.f32 %v458_v43, %v440_v49  ;;  %v464_v52 = vadd.f32 %v456_v37, %v446_v50  ;;  %468 = vadd.xlane.f32.xlu0 %v467_v46  ;;  %v535_v37 = vsub.s32 0, %v534_v32 }
 0x1fc   : > { %v450_v53 = vpop.f32.mrb[2].mxu1  ;;  %v470_v54 = vadd.f32 %v462_v51, %v461_v47  ;;  %v473_v55 = vadd.f32 %v464_v52, %v463_v48 }
 0x1fd   : > { %v465_v56 = vadd.f32 %v457_v42, %v450_v53  ;;  %v452_v57 = vpop.f32.mrb[3].mxu1  ;;  %v536_v42 = vrot.slane %v531_v40, %v535_v37 }
 0x1fe   : > { %v466_v58 = vadd.f32 %v458_v43, %v452_v57  ;;  %471 = vadd.xlane.f32.xlu1 %v470_v54  ;;  %474 = vadd.xlane.f32.xlu0 %v473_v55  ;;  %v540_v43 = vrot.slane %v531_v40, %v539_v38 }
 0x200   : > { %v476_v59 = vadd.f32 %v466_v58, %v465_v56 }
 0x202   : > { %477 = vadd.xlane.f32.xlu0 %v476_v59 }
 0x287   : > { %v469_v60 = vpop.xlane.xlu0 %468 }
 0x288   : > { %v479_v61 = vmul.f32 0.00390625, %v469_v60 }
 0x28a   : > { %v483_v62 = vsub.f32 %v459_v39, %v479_v61  ;;  %v484_v63 = vsub.f32 %v460_v41, %v479_v61  ;;  %v551_v41 = vld [vmem:[#allocation10] sm:$0x3] }
 0x28b   : > { %v472_v0 = vpop.xlane.xlu1 %471  ;;  %v475_v1 = vpop.xlane.xlu0 %474  ;;  %v556_v45 = vrot.slane %v551_v41, %v535_v37  ;;  %v560_v46 = vrot.slane %v551_v41, %v539_v38 }
 0x28c   : > { %v480_v2 = vmul.f32 0.00390625, %v472_v0  ;;  %v481_v3 = vmul.f32 0.00390625, %v475_v1  ;;  %v491_v4 = vmul.f32 %v483_v62, %v483_v62  ;;  %v492_v5 = vmul.f32 %v484_v63, %v484_v63 }
 0x28e   : > { %v485_v6 = vsub.f32 %v461_v47, %v480_v2  ;;  %v486_v7 = vsub.f32 %v462_v51, %v480_v2  ;;  %v487_v8 = vsub.f32 %v463_v48, %v481_v3  ;;  %v488_v9 = vsub.f32 %v464_v52, %v481_v3 }
 0x28f   : > { %v478_v10 = vpop.xlane.xlu0 %477  ;;  %v499_v11 = vadd.f32 %v492_v5, %v491_v4 }
 0x290   : > { %v482_v12 = vmul.f32 0.00390625, %v478_v10  ;;  %v493_v13 = vmul.f32 %v485_v6, %v485_v6  ;;  %v494_v14 = vmul.f32 %v486_v7, %v486_v7  ;;  %v495_v15 = vmul.f32 %v487_v8, %v487_v8 }
 0x291   : > { %500 = vadd.xlane.f32.xlu1 %v499_v11  ;;  %v496_v16 = vmul.f32 %v488_v9, %v488_v9 }
 0x292   : > { %v489_v17 = vsub.f32 %v465_v56, %v482_v12  ;;  %v490_v18 = vsub.f32 %v466_v58, %v482_v12  ;;  %v502_v19 = vadd.f32 %v494_v14, %v493_v13 }
 0x293   : > { %v505_v20 = vadd.f32 %v496_v16, %v495_v15 }
 0x294   : > { %503 = vadd.xlane.f32.xlu0 %v502_v19  ;;  %v497_v21 = vmul.f32 %v489_v17, %v489_v17  ;;  %v498_v22 = vmul.f32 %v490_v18, %v490_v18 }
 0x295   : > { %506 = vadd.xlane.f32.xlu1 %v505_v20 }
 0x296   : > { %v508_v23 = vadd.f32 %v498_v22, %v497_v21 }
 0x298   : > { %509 = vadd.xlane.f32.xlu0 %v508_v23 }
 0x31e   : > { %v501_v24 = vpop.xlane.xlu1 %500 }
 0x31f   : > { %v511_v25 = vmul.f32 0.00390625, %v501_v24 }
 0x321   : > { %v515_v27 = vadd.f32 1e-12, %v511_v25  ;;  %v504_v28 = vpop.xlane.xlu0 %503 }
 0x322   : > { %v507_v29 = vpop.xlane.xlu1 %506  ;;  %v512_v30 = vmul.f32 0.00390625, %v504_v28 }
 0x323   : > { %848 = vrsqrt.f32 %v515_v27  ;;  %v513_v31 = vmul.f32 0.00390625, %v507_v29 }
 0x324   : > { %v516_v33 = vadd.f32 1e-12, %v512_v30 }
 0x325   : > { %v517_v34 = vadd.f32 1e-12, %v513_v31  ;;  %v510_v35 = vpop.xlane.xlu0 %509 }
 0x326   : > { %850 = vrsqrt.f32 %v516_v33  ;;  %v514_v36 = vmul.f32 0.00390625, %v510_v35 }
 0x327   : > { %852 = vrsqrt.f32 %v517_v34 }
 0x328   : > { %v518_v39 = vadd.f32 1e-12, %v514_v36 }
 0x32a   : > { %854 = vrsqrt.f32 %v518_v39 }
 0x32d   : > { %v849_v44 = vpop.eup %848 }
 0x32e   : > { %v523_v26 = vmul.f32 %v849_v44, %v483_v62  ;;  %v524_v47 = vmul.f32 %v849_v44, %v484_v63 }
 0x330   : > { %v851_v48 = vpop.eup %850  ;;  %v543_v49 = vmul.f32 %v536_v42, %v523_v26  ;;  %v544_v50 = vmul.f32 %v540_v43, %v524_v47 }
 0x331   : > { %v853_v51 = vpop.eup %852  ;;  %v525_v52 = vmul.f32 %v851_v48, %v485_v6  ;;  %v526_v53 = vmul.f32 %v851_v48, %v486_v7 }
 0x332   : > { %v563_v54 = vadd.f32 %v556_v45, %v543_v49  ;;  %v564_v55 = vadd.f32 %v560_v46, %v544_v50  ;;  %v527_v56 = vmul.f32 %v853_v51, %v487_v8  ;;  %v528_v57 = vmul.f32 %v853_v51, %v488_v9 }
 0x333   : > { %v545_v58 = vmul.f32 %v536_v42, %v525_v52  ;;  %v546_v59 = vmul.f32 %v540_v43, %v526_v53 }
 0x334   : > { %v855_v60 = vpop.eup %854  ;;  %571 = vst [vmem:[%s296_s26] sm:$0xff] %v563_v54  ;;  %572 = vst [vmem:[%s296_s26 + $0x8] sm:$0xff] %v564_v55  ;;  %v547_v61 = vmul.f32 %v536_v42, %v527_v56  ;;  %v548_v62 = vmul.f32 %v540_v43, %v528_v57 }
 0x335   : > { %v565_v63 = vadd.f32 %v556_v45, %v545_v58  ;;  %v566_v0 = vadd.f32 %v560_v46, %v546_v59  ;;  %v529_v1 = vmul.f32 %v855_v60, %v489_v17  ;;  %v530_v2 = vmul.f32 %v855_v60, %v490_v18 }
 0x336   : > { %v567_v3 = vadd.f32 %v556_v45, %v547_v61  ;;  %v568_v4 = vadd.f32 %v560_v46, %v548_v62 }
 0x337   : > { %573 = vst [vmem:[%s296_s26 + $0x10] sm:$0xff] %v565_v63  ;;  %574 = vst [vmem:[%s296_s26 + $0x18] sm:$0xff] %v566_v0  ;;  %v549_v5 = vmul.f32 %v536_v42, %v529_v1  ;;  %v550_v6 = vmul.f32 %v540_v43, %v530_v2 }
 0x338   : > { %575 = vst [vmem:[%s296_s26 + $0x20] sm:$0xff] %v567_v3  ;;  %576 = vst [vmem:[%s296_s26 + $0x28] sm:$0xff] %v568_v4 }
 0x339   : > { %v569_v7 = vadd.f32 %v556_v45, %v549_v5  ;;  %v570_v8 = vadd.f32 %v560_v46, %v550_v6 }
 0x33b   : > { %577 = vst [vmem:[%s296_s26 + $0x30] sm:$0xff] %v569_v7  ;;  %578 = vst [vmem:[%s296_s26 + $0x38] sm:$0xff] %v570_v8 }
 0x33c   : > { %1011 = shalt.err (!%p1008_p13)
}
 0x33d   : > { %s1012_s27 = scalar_lea.hbm %s1370_s17, 1024  ;;  %s1016_s30 = scalar_lea.hbm %s1421_s5, 2048 }
 0x33e   : > { %p1013_p9 = scmp.ne.s32.totalorder %s1370_s17, %s1012_s27  ;;  %p1017_p11 = scmp.lt.u32.totalorder %s1370_s17, %s1421_s5 }
 0x33f   : > { %p1018_p8 = scmp.lt.u32.totalorder %s1016_s30, %s1012_s27  ;;  %p1020_p3 = scmp.lt.u32.totalorder %s1012_s27, %s1370_s17 }
 0x340   : > { %p1014_p0 = pnand %p1013_p9, %p1283_p10 }
 0x341   : > { %p1019_p6 = por %p1018_p8, %p1017_p11 }
 0x342   : > { %p1015_p4 = pneg %p1014_p0 }
 0x343   : > { %p1021_p5 = por %p1020_p3, %p1019_p6 }
 0x345   : > { %p1022_p7 = pnand %p1021_p5, %p1015_p4 }
 0x347   : > { %1025 = shalt.err (!%p1022_p7)
}
 0x348   : > { %s1086_s11 = smov 256   ;;  %s1087_s15 = smov 16  }
 0x349   : > { %769 = dma.vmem_to_hbm [thread:$0]  (%p1283_p10), %s1372_s13, 1024, %s1370_s17, %s580_s22, %s1086_s11, %s1086_s11, %s1087_s15  }
 0x34a PF: > { %s609_s8 = sand.u32 1, %s1060_s18   ;;  %p1439_p12 = scmp.ne.s32.totalorder %s1426_s25, 0 }
 0x34b   : > { %p1440_p1 = scmp.ge.s32.totalorder %s1072_s21, 2  ;;  %s610_s9 = scalar_lea.sflag [#allocation4], %s609_s8 }
 0x34d   : > { %p789_p2 = pnand %p1440_p1, %p1439_p12 }
 0x34f   : > { %1055 = dma.done.wait (!%p789_p2), %s610_s9, 1024  }
 0x350   : > { %1057 = vsyncadd (!%p789_p2), %s610_s9, 4294966272  ;;  %p20_p13 = scmp.ge.s32.totalorder %s1273_s14, 4   ;;  %s1441_s18 = smov %s1064_s19 }
 0x351   : > { %s1442_s19 = smov %s1068_s20  ;;  %s1443_s20 = smov %s1289_s28 }
 0x352   : > { %s1444_s21 = smov %s1273_s14  ;;  %22 = sbr.rel (!%p20_p13) target bundleno = 7 (0x7), region = 101 }
 0x359   :  { %615 = vsyncpa [#allocation3], 1 }
 0x35a   :  { %617 = vsyncpa [#allocation3 + $0x1], 1 }
 0x35b   :  { %618 = vsyncpa [#allocation6], 1 }
 0x35c   :  { %619 = vsyncpa [#allocation9], 1 }
 0x35d   :  { %620 = vsyncpa [#allocation4], 1 }
 0x35e   :  { %622 = vsyncpa [#allocation4 + $0x1], 1 }

</bundles_post_ra>
